<compile_context>
chip_gen: v5e
topology: v5e:2x2
jax: 0.10.0
libtpu: 0.0.40
codegen_flags: <defaults>
</compile_context>

<pallas_src>
import math
import numpy as np
import jax
import jax.numpy as jnp
from jax.experimental import pallas as pl
from jax.experimental.pallas import tpu as pltpu

LANE = 128
SUBLANE = 8


def kaiser_sinc_filter1d(cutoff, half_width, kernel_size):
    """NumPy port of the PyTorch kaiser_sinc_filter1d; returns (kernel_size,) f32."""
    even = kernel_size % 2 == 0
    half_size = kernel_size // 2
    delta_f = 4 * half_width
    A = 2.285 * (half_size - 1) * math.pi * delta_f + 7.95
    if A > 50.0:
        beta = 0.1102 * (A - 8.7)
    elif A >= 21.0:
        beta = 0.5842 * (A - 21) ** 0.4 + 0.07886 * (A - 21.0)
    else:
        beta = 0.0
    window = np.kaiser(kernel_size, beta)  # == torch.kaiser_window(periodic=False)
    if even:
        time = np.arange(-half_size, half_size) + 0.5
    else:
        time = np.arange(kernel_size) - half_size
    if cutoff == 0:
        filt = np.zeros_like(time)
    else:
        filt = 2 * cutoff * window * np.sinc(2 * cutoff * time)
        filt = filt / filt.sum()
    return filt.astype(np.float32)


def _round_up(v, m):
    return (v + m - 1) // m * m


def _make_kernel(rb, tl, pad_l, pad_r, taps, has_halo):
    """FIR over one (rb rows, tl lanes) tile; replicate-pad halo handled in-kernel."""
    taps = [float(t) for t in taps]

    def fir(xc, left_ctx, right_ctx):
        # out[:, n] = sum_k taps[k] * x_clamped[:, tile_start + n + k - pad_l]
        acc = taps[pad_l] * xc
        for s in range(1, pad_l + 1):          # negative shifts, tap index pad_l - s
            sh = jnp.concatenate([left_ctx[:, pad_l - s:], xc[:, :tl - s]], axis=1)
            acc = acc + taps[pad_l - s] * sh
        for s in range(1, pad_r + 1):          # positive shifts, tap index pad_l + s
            sh = jnp.concatenate([xc[:, s:], right_ctx[:, :s]], axis=1)
            acc = acc + taps[pad_l + s] * sh
        return acc

    if has_halo:
        def kernel(xc_ref, xl_ref, xr_ref, out_ref):
            j = pl.program_id(1)
            n_t = pl.num_programs(1)
            xc = xc_ref[...]                                           # (rb, tl)
            left_edge = jnp.broadcast_to(xc[:, 0:1], (rb, pad_l))
            right_edge = jnp.broadcast_to(xc[:, tl - 1:tl], (rb, pad_r))
            # Interior tiles take halo columns from the 128-lane neighbor blocks;
            # boundary tiles replicate their own edge column (replicate pad).
            left_ctx = jnp.where(j > 0, xl_ref[:, LANE - pad_l:], left_edge)
            right_ctx = jnp.where(j < n_t - 1, xr_ref[:, :pad_r], right_edge)
            out_ref[...] = fir(xc, left_ctx, right_ctx).astype(out_ref.dtype)
    else:
        def kernel(xc_ref, out_ref):
            xc = xc_ref[...]                                           # (rb, tl)
            left_ctx = jnp.broadcast_to(xc[:, 0:1], (rb, pad_l))
            right_ctx = jnp.broadcast_to(xc[:, tl - 1:tl], (rb, pad_r))
            out_ref[...] = fir(xc, left_ctx, right_ctx).astype(out_ref.dtype)

    return kernel


def low_pass_filter1d(x, cutoff=0.5, half_width=0.6, stride=1, kernel_size=12):
    """x: (B, C, T) -> (B, C, T); matches LowPassFilter1d.forward with stride=1."""
    if stride != 1:
        # TODO(synk): strided (decimating) low-pass not implemented.
        raise NotImplementedError("stride != 1 not supported")
    B, C, T = x.shape
    orig_dtype = x.dtype
    xf = x.astype(jnp.float32)

    even = kernel_size % 2 == 0
    pad_l = kernel_size // 2 - int(even)
    pad_r = kernel_size // 2
    taps = kaiser_sinc_filter1d(cutoff, half_width, kernel_size)
    assert 0 <= pad_l < LANE and 0 < pad_r < LANE

    # Fold (B, C) into a single row axis; tile rows and time.
    R = B * C
    r_pad = _round_up(max(R, 1), SUBLANE)
    rb = next(c for c in (256, 128, 64, 32, 16, 8) if r_pad % c == 0)

    t_pad = _round_up(max(T, 1), LANE)
    nb = t_pad // LANE                         # total 128-lane blocks
    # Largest multiple-of-128 time tile dividing t_pad with rb*tl*4 <= ~2 MiB.
    max_blocks = max(1, min(nb, (2 << 20) // (rb * LANE * 4)))
    tlb = next(d for d in range(max_blocks, 0, -1) if nb % d == 0)
    tl = tlb * LANE
    assert pad_l <= tl and pad_r <= tl

    x2 = xf.reshape(R, T)
    if t_pad != T:
        # Minimal lane-alignment pad (edge mode keeps the replicate-clamp exact).
        x2 = jnp.pad(x2, ((0, 0), (0, t_pad - T)), mode="edge")
    if r_pad != R:
        x2 = jnp.pad(x2, ((0, r_pad - R), (0, 0)))

    n_r, n_t = r_pad // rb, t_pad // tl
    has_halo = n_t > 1

    kernel = _make_kernel(rb, tl, pad_l, pad_r, taps, has_halo)

    in_specs = [pl.BlockSpec((rb, tl), lambda i, j: (i, j))]
    inputs = [x2]
    if has_halo:
        in_specs += [
            # 128-lane block immediately left of the tile (clamped at 0)
            pl.BlockSpec((rb, LANE),
                         lambda i, j: (i, jnp.maximum(j * tlb - 1, 0))),
            # 128-lane block immediately right of the tile (clamped at end)
            pl.BlockSpec((rb, LANE),
                         lambda i, j: (i, jnp.minimum((j + 1) * tlb, nb - 1))),
        ]
        inputs += [x2, x2]

    # VMEM budget: double-buffered center/out tiles + halo blocks + temporaries.
    block_bytes = rb * tl * 4
    halo_bytes = rb * LANE * 4
    vmem_bytes = int(min(40 << 20, max(24 << 20, 6 * block_bytes + 8 * halo_bytes)))

    out2 = pl.pallas_call(
        kernel,
        out_shape=jax.ShapeDtypeStruct((r_pad, t_pad), jnp.float32),
        grid_spec=pltpu.PrefetchScalarGridSpec(
            num_scalar_prefetch=0,
            grid=(n_r, n_t),
            in_specs=in_specs,
            out_specs=pl.BlockSpec((rb, tl), lambda i, j: (i, j)),
        ),
        compiler_params=pltpu.CompilerParams(
            dimension_semantics=("parallel", "parallel"),
            vmem_limit_bytes=vmem_bytes,
        ),
    )(*inputs)

    return out2[:R, :T].reshape(B, C, T).astype(orig_dtype)


def _reference_np(x, cutoff=0.5, half_width=0.6, kernel_size=12):
    """Pure-NumPy reference mirroring LowPassFilter1d.forward (stride=1)."""
    w = kaiser_sinc_filter1d(cutoff, half_width, kernel_size).astype(np.float64)
    even = kernel_size % 2 == 0
    pad_l = kernel_size // 2 - int(even)
    pad_r = kernel_size // 2
    xnp = np.asarray(x, np.float64)
    xp = np.pad(xnp, ((0, 0), (0, 0), (pad_l, pad_r)), mode="edge")
    T = x.shape[-1]
    out = np.zeros(x.shape, np.float64)
    for k in range(kernel_size):
        out += w[k] * xp[:, :, k:k + T]
    return out


if __name__ == "__main__":
    key = jax.random.PRNGKey(0)
    # (2, 4, 256): exact 128-alignment, single time tile (halo-free kernel path).
    # (2, 3, 300): unaligned T (edge-mode lane pad) + row padding (B*C=6 -> 8).
    # (4, 64, 2560): multi-time-tile path (rb=256, tl=1280, n_t=2) -> exercises
    #                the in-kernel 128-lane halo blocks and clamped index_maps.
    for (B, C, T) in [(2, 4, 256), (2, 3, 300), (4, 64, 2560)]:
        key, sub = jax.random.split(key)
        x = jax.random.normal(sub, (B, C, T), dtype=jnp.float32)
        out = jax.block_until_ready(low_pass_filter1d(x))
        assert out.shape == (B, C, T) and out.dtype == jnp.float32
        ref = _reference_np(np.asarray(x))
        np.testing.assert_allclose(np.asarray(out), ref, rtol=1e-4, atol=1e-5)
    print("KERNEL_OK")
</pallas_src>

<mosaic_0001>
module attributes {stable_mosaic.version = 11 : i64} {
  func.func @kernel(%arg0: i32, %arg1: i32, %arg2: memref<8x256xf32, #tpu.memory_space<vmem>>, %arg3: memref<8x256xf32, #tpu.memory_space<vmem>>) attributes {dimension_semantics = [#tpu.dimension_semantics<parallel>, #tpu.dimension_semantics<parallel>], iteration_bounds = array<i64: 1, 1>, scalar_prefetch = 0 : i64, scratch_operands = 0 : i64, tpu.core_type = #tpu.core_type<tc>, window_params = [{transform_indices = @transform_0, window_bounds = array<i64: 8, 256>}, {transform_indices = @transform_1, window_bounds = array<i64: 8, 256>}]} {
    %c0 = arith.constant 0 : index
    %c0_0 = arith.constant 0 : index
    %0 = vector.load %arg2[%c0, %c0_0] : memref<8x256xf32, #tpu.memory_space<vmem>>, vector<8x256xf32>
    %1 = vector.extract_strided_slice %0 {offsets = [0, 0], sizes = [8, 1], strides = [1, 1]} : vector<8x256xf32> to vector<8x1xf32>
    %2 = vector.shape_cast %1 : vector<8x1xf32> to vector<8x1xf32>
    %3 = vector.broadcast %2 : vector<8x1xf32> to vector<8x5xf32>
    %4 = vector.extract_strided_slice %0 {offsets = [0, 255], sizes = [8, 1], strides = [1, 1]} : vector<8x256xf32> to vector<8x1xf32>
    %5 = vector.shape_cast %4 : vector<8x1xf32> to vector<8x1xf32>
    %6 = vector.broadcast %5 : vector<8x1xf32> to vector<8x6xf32>
    %cst = arith.constant 0.61359781 : f32
    %7 = vector.broadcast %cst : f32 to vector<8x256xf32>
    %8 = arith.mulf %7, %0 : vector<8x256xf32>
    %9 = vector.extract_strided_slice %3 {offsets = [0, 4], sizes = [8, 1], strides = [1, 1]} : vector<8x5xf32> to vector<8x1xf32>
    %10 = vector.extract_strided_slice %0 {offsets = [0, 0], sizes = [8, 255], strides = [1, 1]} : vector<8x256xf32> to vector<8x255xf32>
    %11 = tpu.concatenate %9, %10 in 1 : vector<8x1xf32>, vector<8x255xf32> -> vector<8x256xf32>
    %cst_1 = arith.constant -0.151523769 : f32
    %12 = vector.broadcast %cst_1 : f32 to vector<8x256xf32>
    %13 = arith.mulf %12, %11 : vector<8x256xf32>
    %14 = arith.addf %8, %13 : vector<8x256xf32>
    %15 = vector.extract_strided_slice %3 {offsets = [0, 3], sizes = [8, 2], strides = [1, 1]} : vector<8x5xf32> to vector<8x2xf32>
    %16 = vector.extract_strided_slice %0 {offsets = [0, 0], sizes = [8, 254], strides = [1, 1]} : vector<8x256xf32> to vector<8x254xf32>
    %17 = tpu.concatenate %15, %16 in 1 : vector<8x2xf32>, vector<8x254xf32> -> vector<8x256xf32>
    %cst_2 = arith.constant 0.0483337305 : f32
    %18 = vector.broadcast %cst_2 : f32 to vector<8x256xf32>
    %19 = arith.mulf %18, %17 : vector<8x256xf32>
    %20 = arith.addf %14, %19 : vector<8x256xf32>
    %21 = vector.extract_strided_slice %3 {offsets = [0, 2], sizes = [8, 3], strides = [1, 1]} : vector<8x5xf32> to vector<8x3xf32>
    %22 = vector.extract_strided_slice %0 {offsets = [0, 0], sizes = [8, 253], strides = [1, 1]} : vector<8x256xf32> to vector<8x253xf32>
    %23 = tpu.concatenate %21, %22 in 1 : vector<8x3xf32>, vector<8x253xf32> -> vector<8x256xf32>
    %cst_3 = arith.constant -0.0121011585 : f32
    %24 = vector.broadcast %cst_3 : f32 to vector<8x256xf32>
    %25 = arith.mulf %24, %23 : vector<8x256xf32>
    %26 = arith.addf %20, %25 : vector<8x256xf32>
    %27 = vector.extract_strided_slice %3 {offsets = [0, 1], sizes = [8, 4], strides = [1, 1]} : vector<8x5xf32> to vector<8x4xf32>
    %28 = vector.extract_strided_slice %0 {offsets = [0, 0], sizes = [8, 252], strides = [1, 1]} : vector<8x256xf32> to vector<8x252xf32>
    %29 = tpu.concatenate %27, %28 in 1 : vector<8x4xf32>, vector<8x252xf32> -> vector<8x256xf32>
    %cst_4 = arith.constant 0.00172930211 : f32
    %30 = vector.broadcast %cst_4 : f32 to vector<8x256xf32>
    %31 = arith.mulf %30, %29 : vector<8x256xf32>
    %32 = arith.addf %26, %31 : vector<8x256xf32>
    %33 = vector.extract_strided_slice %0 {offsets = [0, 0], sizes = [8, 251], strides = [1, 1]} : vector<8x256xf32> to vector<8x251xf32>
    %34 = tpu.concatenate %3, %33 in 1 : vector<8x5xf32>, vector<8x251xf32> -> vector<8x256xf32>
    %cst_5 = arith.constant -3.5928555E-5 : f32
    %35 = vector.broadcast %cst_5 : f32 to vector<8x256xf32>
    %36 = arith.mulf %35, %34 : vector<8x256xf32>
    %37 = arith.addf %32, %36 : vector<8x256xf32>
    %38 = vector.extract_strided_slice %0 {offsets = [0, 1], sizes = [8, 255], strides = [1, 1]} : vector<8x256xf32> to vector<8x255xf32>
    %39 = vector.extract_strided_slice %6 {offsets = [0, 0], sizes = [8, 1], strides = [1, 1]} : vector<8x6xf32> to vector<8x1xf32>
    %40 = tpu.concatenate %38, %39 in 1 : vector<8x255xf32>, vector<8x1xf32> -> vector<8x256xf32>
    %cst_6 = arith.constant 0.61359781 : f32
    %41 = vector.broadcast %cst_6 : f32 to vector<8x256xf32>
    %42 = arith.mulf %41, %40 : vector<8x256xf32>
    %43 = arith.addf %37, %42 : vector<8x256xf32>
    %44 = vector.extract_strided_slice %0 {offsets = [0, 2], sizes = [8, 254], strides = [1, 1]} : vector<8x256xf32> to vector<8x254xf32>
    %45 = vector.extract_strided_slice %6 {offsets = [0, 0], sizes = [8, 2], strides = [1, 1]} : vector<8x6xf32> to vector<8x2xf32>
    %46 = tpu.concatenate %44, %45 in 1 : vector<8x254xf32>, vector<8x2xf32> -> vector<8x256xf32>
    %cst_7 = arith.constant -0.151523769 : f32
    %47 = vector.broadcast %cst_7 : f32 to vector<8x256xf32>
    %48 = arith.mulf %47, %46 : vector<8x256xf32>
    %49 = arith.addf %43, %48 : vector<8x256xf32>
    %50 = vector.extract_strided_slice %0 {offsets = [0, 3], sizes = [8, 253], strides = [1, 1]} : vector<8x256xf32> to vector<8x253xf32>
    %51 = vector.extract_strided_slice %6 {offsets = [0, 0], sizes = [8, 3], strides = [1, 1]} : vector<8x6xf32> to vector<8x3xf32>
    %52 = tpu.concatenate %50, %51 in 1 : vector<8x253xf32>, vector<8x3xf32> -> vector<8x256xf32>
    %cst_8 = arith.constant 0.0483337305 : f32
    %53 = vector.broadcast %cst_8 : f32 to vector<8x256xf32>
    %54 = arith.mulf %53, %52 : vector<8x256xf32>
    %55 = arith.addf %49, %54 : vector<8x256xf32>
    %56 = vector.extract_strided_slice %0 {offsets = [0, 4], sizes = [8, 252], strides = [1, 1]} : vector<8x256xf32> to vector<8x252xf32>
    %57 = vector.extract_strided_slice %6 {offsets = [0, 0], sizes = [8, 4], strides = [1, 1]} : vector<8x6xf32> to vector<8x4xf32>
    %58 = tpu.concatenate %56, %57 in 1 : vector<8x252xf32>, vector<8x4xf32> -> vector<8x256xf32>
    %cst_9 = arith.constant -0.0121011585 : f32
    %59 = vector.broadcast %cst_9 : f32 to vector<8x256xf32>
    %60 = arith.mulf %59, %58 : vector<8x256xf32>
    %61 = arith.addf %55, %60 : vector<8x256xf32>
    %62 = vector.extract_strided_slice %0 {offsets = [0, 5], sizes = [8, 251], strides = [1, 1]} : vector<8x256xf32> to vector<8x251xf32>
    %63 = vector.extract_strided_slice %6 {offsets = [0, 0], sizes = [8, 5], strides = [1, 1]} : vector<8x6xf32> to vector<8x5xf32>
    %64 = tpu.concatenate %62, %63 in 1 : vector<8x251xf32>, vector<8x5xf32> -> vector<8x256xf32>
    %cst_10 = arith.constant 0.00172930211 : f32
    %65 = vector.broadcast %cst_10 : f32 to vector<8x256xf32>
    %66 = arith.mulf %65, %64 : vector<8x256xf32>
    %67 = arith.addf %61, %66 : vector<8x256xf32>
    %68 = vector.extract_strided_slice %0 {offsets = [0, 6], sizes = [8, 250], strides = [1, 1]} : vector<8x256xf32> to vector<8x250xf32>
    %69 = tpu.concatenate %68, %6 in 1 : vector<8x250xf32>, vector<8x6xf32> -> vector<8x256xf32>
    %cst_11 = arith.constant -3.5928555E-5 : f32
    %70 = vector.broadcast %cst_11 : f32 to vector<8x256xf32>
    %71 = arith.mulf %70, %69 : vector<8x256xf32>
    %72 = arith.addf %67, %71 : vector<8x256xf32>
    %c0_12 = arith.constant 0 : index
    %c0_13 = arith.constant 0 : index
    %73 = vector.load %arg3[%c0_12, %c0_13] : memref<8x256xf32, #tpu.memory_space<vmem>>, vector<8x256xf32>
    tpu.vector_store %arg3[%c0_12, %c0_13], %72 {strides = array<i32>} : memref<8x256xf32, #tpu.memory_space<vmem>>, vector<8x256xf32>,
    return
  }
  func.func @transform_0(%arg0: i32, %arg1: i32) -> (i32, i32) {
    %c0_i32 = arith.constant 0 : i32
    return %arg0, %arg1 : i32, i32
  }
  func.func @transform_1(%arg0: i32, %arg1: i32) -> (i32, i32) {
    %c0_i32 = arith.constant 0 : i32
    return %arg0, %arg1 : i32, i32
  }
}

</mosaic_0001>

<bundles_post_ra>
// kernel: tpu_custom_call.1
= control target key start
LH: loop header
LB: loop body
LE: loop exit
PB: predicated region body
PF: predicated region fallthrough
CT: control target
= control target key end

     0   :  { %6 = vsyncpa [#allocation3], 0  ;;  %s322_s0 = inlined_call_operand.hbm [shape: f32[8,256], index: 0, kind: input, shape index: {}]   ;;  %s323_s1 = inlined_call_operand.hbm [shape: f32[8,256], index: 1, kind: output, shape index: {}]  }
   0x1   :  { %7 = vsyncpa [#allocation4], 0  ;;  %s13_s8 = sshll.u32 %s322_s0, 4  ;;  %s268_s9 = smov [#allocation2]   ;;  %s14_s8 = int_to_ptr.hbm [resolvable:$true] %s13_s8 }
   0x2   :  { %s15_s10 = sshll.u32 %s268_s9, 4  ;;  %s16_s10 = int_to_ptr.vmem [resolvable:$true] %s15_s10 }
   0x3   :  { %18 = dma.hbm_to_vmem [thread:$0]  %s14_s8, 256, %s16_s10, [#allocation3]  }
   0x4   :  { %264 = dma.done.wait [#allocation3], 256  }
   0x5   :  { %265 = vsyncadd [#allocation3], 4294967040  ;;  %v269_v0 = vmov 0   ;;  %v23_v1 = vld [vmem:[#allocation2] sm:$0xff]  ;;  %s270_s11 = smov 2   ;;  %s271_s12 = smov 1  }
   0x6   :  { %214 = vset.pattern.permute.xlu0 %v269_v0  ;;  %50 = vrot.lane.b32.xlu2 %v23_v1, %s270_s11  ;;  %v296_v2 = vld [vmem:[#allocation2 + $0x8] sm:$0xff]  ;;  %v272_v3 = vmov 127   ;;  %s273_s0 = smov 3   ;;  %s274_s13 = smov 4   ;;  %vm41_vm0 = vcmask 7168   ;;  %vm54_vm1 = vcmask 15360  }
   0x7   :  { %37 = vrot.lane.b32.xlu1 %v23_v1, %s271_s12  ;;  %27 = vperm.xlu0 %214, %v23_v1   ;;  %s275_s14 = smov 5   ;;  %s276_s15 = smov 127   ;;  %v36_v19 = vmul.f32 0.6135978, %v296_v2  ;;  %vm67_vm2 = vcmask 23552   ;;  %vm80_vm3 = vcmask 31744  }
   0x8   :  { %s277_s16 = smov 126   ;;  %s278_s17 = smov 125   ;;  %v35_v21 = vmul.f32 0.6135978, %v23_v1  ;;  %vm93_vm4 = vcmask 39936   ;;  %vm106_vm5 = vcmask 1039360  }
   0x9   :  { %s279_s18 = smov 124   ;;  %s280_s19 = smov 123   ;;  %vm119_vm6 = vcmask 1031168   ;;  %vm132_vm7 = vcmask 1022976   ;;  %vm145_vm8 = vcmask 1014784   ;;  %vm158_vm9 = vcmask 1006592  }
   0xa   :  { %s281_s20 = smov 122   ;;  %vm171_vm10 = vcmask 998400   ;;  %s282_s21 = smov [#allocation5]  }
   0xb   :  { %s187_s22 = sshll.u32 %s282_s21, 4  ;;  %s189_s25 = sshll.u32 %s323_s1, 4  ;;  %s188_s22 = int_to_ptr.vmem [resolvable:$true] %s187_s22  ;;  %s190_s25 = int_to_ptr.hbm [resolvable:$true] %s189_s25 }
   0xe   :  { %52 = vrot.lane.b32.xlu2 %v296_v2, %s270_s11 }
   0xf   :  { %39 = vrot.lane.b32.xlu1 %v296_v2, %s271_s12  ;;  %215 = vset.pattern.permute.xlu0 %v272_v3 }
  0x10   :  { %32 = vperm.xlu0 %215, %v296_v2  }
  0x16   :  { %65 = vrot.lane.b32.xlu2 %v296_v2, %s273_s0 }
  0x17   :  { %63 = vrot.lane.b32.xlu1 %v23_v1, %s273_s0 }
  0x18   :  { %76 = vrot.lane.b32.xlu0 %v23_v1, %s274_s13 }
  0x1e   :  { %89 = vrot.lane.b32.xlu2 %v23_v1, %s275_s14 }
  0x1f   :  { %78 = vrot.lane.b32.xlu1 %v296_v2, %s274_s13 }
  0x20   :  { %91 = vrot.lane.b32.xlu0 %v296_v2, %s275_s14 }
  0x26   :  { %104 = vrot.lane.b32.xlu2 %v296_v2, %s276_s15 }
  0x27   :  { %102 = vrot.lane.b32.xlu1 %v23_v1, %s276_s15 }
  0x28   :  { %115 = vrot.lane.b32.xlu0 %v23_v1, %s277_s16 }
  0x2e   :  { %128 = vrot.lane.b32.xlu2 %v23_v1, %s278_s17 }
  0x2f   :  { %117 = vrot.lane.b32.xlu1 %v296_v2, %s277_s16 }
  0x30   :  { %130 = vrot.lane.b32.xlu0 %v296_v2, %s278_s17 }
  0x36   :  { %143 = vrot.lane.b32.xlu2 %v296_v2, %s279_s18 }
  0x37   :  { %141 = vrot.lane.b32.xlu1 %v23_v1, %s279_s18 }
  0x38   :  { %154 = vrot.lane.b32.xlu0 %v23_v1, %s280_s19 }
  0x3e   :  { %167 = vrot.lane.b32.xlu2 %v23_v1, %s281_s20 }
  0x3f   :  { %156 = vrot.lane.b32.xlu1 %v296_v2, %s280_s19 }
  0x40   :  { %169 = vrot.lane.b32.xlu0 %v296_v2, %s281_s20 }
  0x60   :  { %v51_v4 = vpop.permute.xlu2 %50 }
  0x68   :  { %v53_v5 = vpop.permute.xlu2 %52 }
  0x69   :  { %v55_v23 = vsel %vm54_vm1, %v51_v4, %v53_v5 }
  0x6a   :  { %v60_v30 = vmul.f32 0.04833373, %v55_v23 }
  0x70   :  { %v66_v8 = vpop.permute.xlu2 %65 }
  0x78   :  { %v90_v12 = vpop.permute.xlu2 %89 }
  0x79   :  { %v38_v6 = vpop.permute.xlu1 %37  ;;  %v28_v7 = vpop.permute.xlu0 %27 }
  0x7a   :  { %v45_v17 = vsel %vm41_vm0, %v23_v1, %v38_v6  ;;  %v58_v24 = vsel %vm54_vm1, %v28_v7, %v51_v4  ;;  %v97_v50 = vsel %vm93_vm4, %v28_v7, %v90_v12 }
  0x7b   :  { %v46_v22 = vmul.f32 -0.15152377, %v45_v17  ;;  %v59_v32 = vmul.f32 0.04833373, %v58_v24  ;;  %v98_v57 = vmul.f32 -3.5928555e-05, %v97_v50 }
  0x7d   :  { %v48_v31 = vadd.f32 %v46_v22, %v35_v21 }
  0x7f   :  { %v61_v41 = vadd.f32 %v59_v32, %v48_v31 }
  0x80   :  { %v105_v18 = vpop.permute.xlu2 %104 }
  0x81   :  { %v40_v9 = vpop.permute.xlu1 %39  ;;  %v110_v48 = vsel %vm106_vm5, %v105_v18, %v296_v2 }
  0x82   :  { %v310_v10 = vpop.permute.xlu0 %32  ;;  %v42_v15 = vsel %vm41_vm0, %v38_v6, %v40_v9  ;;  %v112_v53 = vmul.f32 0.6135978, %v110_v48 }
  0x83   :  { %v47_v20 = vmul.f32 -0.15152377, %v42_v15 }
  0x85   :  { %v49_v26 = vadd.f32 %v47_v20, %v36_v19 }
  0x87   :  { %v62_v35 = vadd.f32 %v60_v30, %v49_v26 }
  0x88   :  { %v129_v40 = vpop.permute.xlu2 %128 }
  0x89   :  { %v64_v11 = vpop.permute.xlu1 %63 }
  0x8a   :  { %v77_v13 = vpop.permute.xlu0 %76  ;;  %v68_v25 = vsel %vm67_vm2, %v64_v11, %v66_v8  ;;  %v71_v28 = vsel %vm67_vm2, %v28_v7, %v64_v11 }
  0x8b   :  { %v73_v33 = vmul.f32 -0.0121011585, %v68_v25  ;;  %v72_v36 = vmul.f32 -0.0121011585, %v71_v28  ;;  %v84_v38 = vsel %vm80_vm3, %v28_v7, %v77_v13 }
  0x8c   :  { %v85_v44 = vmul.f32 0.0017293021, %v84_v38 }
  0x8d   :  { %v75_v42 = vadd.f32 %v73_v33, %v62_v35  ;;  %v74_v43 = vadd.f32 %v72_v36, %v61_v41 }
  0x8f   :  { %v87_v54 = vadd.f32 %v85_v44, %v74_v43 }
  0x90   :  { %v144_v61 = vpop.permute.xlu2 %143 }
  0x91   :  { %v79_v14 = vpop.permute.xlu1 %78  ;;  %v100_v62 = vadd.f32 %v98_v57, %v87_v54  ;;  %v149_v11 = vsel %vm145_vm8, %v144_v61, %v310_v10 }
  0x92   :  { %v92_v16 = vpop.permute.xlu0 %91  ;;  %v81_v29 = vsel %vm80_vm3, %v77_v13, %v79_v14  ;;  %v151_v14 = vmul.f32 -0.0121011585, %v149_v11 }
  0x93   :  { %v86_v37 = vmul.f32 0.0017293021, %v81_v29  ;;  %v94_v39 = vsel %vm93_vm4, %v90_v12, %v92_v16 }
  0x94   :  { %v99_v46 = vmul.f32 -3.5928555e-05, %v94_v39 }
  0x95   :  { %v88_v45 = vadd.f32 %v86_v37, %v75_v42 }
  0x97   :  { %v101_v55 = vadd.f32 %v99_v46, %v88_v45 }
  0x98   :  { %v168_v17 = vpop.permute.xlu2 %167 }
  0x99   :  { %v103_v27 = vpop.permute.xlu1 %102  ;;  %v114_v63 = vadd.f32 %v112_v53, %v101_v55 }
  0x9a   :  { %v116_v34 = vpop.permute.xlu0 %115  ;;  %v107_v51 = vsel %vm106_vm5, %v103_v27, %v105_v18 }
  0x9b   :  { %v111_v58 = vmul.f32 0.6135978, %v107_v51 }
  0x9d   :  { %v113_v3 = vadd.f32 %v111_v58, %v100_v62 }
  0xa1   :  { %v118_v47 = vpop.permute.xlu1 %117 }
  0xa2   :  { %v131_v49 = vpop.permute.xlu0 %130  ;;  %v123_v52 = vsel %vm119_vm6, %v118_v47, %v310_v10  ;;  %v120_v56 = vsel %vm119_vm6, %v116_v34, %v118_v47 }
  0xa3   :  { %v125_v59 = vmul.f32 -0.15152377, %v123_v52  ;;  %v136_v60 = vsel %vm132_vm7, %v131_v49, %v310_v10  ;;  %v124_v0 = vmul.f32 -0.15152377, %v120_v56  ;;  %v133_v2 = vsel %vm132_vm7, %v129_v40, %v131_v49 }
  0xa4   :  { %v138_v5 = vmul.f32 0.04833373, %v136_v60  ;;  %v137_v9 = vmul.f32 0.04833373, %v133_v2 }
  0xa5   :  { %v127_v4 = vadd.f32 %v125_v59, %v114_v63  ;;  %v126_v8 = vadd.f32 %v124_v0, %v113_v3 }
  0xa7   :  { %v140_v12 = vadd.f32 %v138_v5, %v127_v4  ;;  %v139_v15 = vadd.f32 %v137_v9, %v126_v8 }
  0xa9   :  { %v142_v1 = vpop.permute.xlu1 %141  ;;  %v153_v21 = vadd.f32 %v151_v14, %v140_v12 }
  0xaa   :  { %v155_v6 = vpop.permute.xlu0 %154  ;;  %v146_v7 = vsel %vm145_vm8, %v142_v1, %v144_v61 }
  0xab   :  { %v150_v13 = vmul.f32 -0.0121011585, %v146_v7 }
  0xad   :  { %v152_v20 = vadd.f32 %v150_v13, %v139_v15 }
  0xb1   :  { %v157_v16 = vpop.permute.xlu1 %156 }
  0xb2   :  { %v159_v18 = vsel %vm158_vm9, %v155_v6, %v157_v16  ;;  %v162_v19 = vsel %vm158_vm9, %v157_v16, %v310_v10  ;;  %v170_v24 = vpop.permute.xlu0 %169 }
  0xb3   :  { %v163_v22 = vmul.f32 0.0017293021, %v159_v18  ;;  %v164_v23 = vmul.f32 0.0017293021, %v162_v19  ;;  %v175_v25 = vsel %vm171_vm10, %v170_v24, %v310_v10  ;;  %v172_v26 = vsel %vm171_vm10, %v168_v17, %v170_v24 }
  0xb4   :  { %v177_v29 = vmul.f32 -3.5928555e-05, %v175_v25  ;;  %v176_v30 = vmul.f32 -3.5928555e-05, %v172_v26 }
  0xb5   :  { %v165_v27 = vadd.f32 %v163_v22, %v152_v20  ;;  %v166_v28 = vadd.f32 %v164_v23, %v153_v21 }
  0xb7   :  { %v179_v31 = vadd.f32 %v177_v29, %v166_v28  ;;  %v178_v32 = vadd.f32 %v176_v30, %v165_v27 }
  0xb9   :  { %181 = vst [vmem:[#allocation5 + $0x8] sm:$0xff] %v179_v31 }
  0xba   :  { %180 = vst [vmem:[#allocation5] sm:$0xff] %v178_v32 }
  0xbb   :  { %192 = dma.vmem_to_hbm [thread:$0]  %s188_s22, 256, %s190_s25, [#allocation4]  }
  0xbc   :  { %266 = dma.done.wait [#allocation4], 256  }
  0xbd   :  { %267 = vsyncadd [#allocation4], 4294967040 }
  0xbe   :  { %197 = vsyncpa [#allocation3], 1 }
  0xbf   :  { %198 = vsyncpa [#allocation4], 1 }

</bundles_post_ra>
